<compile_context>
chip_gen: v7x
topology: tpu7x:2x2x1
jax: 0.10.0
libtpu: 0.0.40
codegen_flags: <defaults>
</compile_context>

<pallas_src>
import jax
import jax.numpy as jnp
from jax.experimental import pallas as pl
from jax.experimental.pallas import tpu as pltpu


def _round_up(x, m):
    return ((x + m - 1) // m) * m


def _round_down_pos(x, m):
    return max(m, (x // m) * m)


def conv_bn_silu_kernel(x_ref, w_ref, b_ref, o_ref):
    # In-kernel cast: x stays in its native dtype in HBM (no wrapper-side cast pass);
    # the bf16 copy lives only transiently in vregs before the MXU matmul.
    x = x_ref[...].astype(w_ref.dtype)
    # 1x1 conv over channels: (tc2, C1) @ (C1, tl) on the MXU, f32 accumulation.
    y = jnp.dot(w_ref[...], x, preferred_element_type=jnp.float32)
    # folded BatchNorm (scale already folded into the weight rows) -> bias add only
    y = y + b_ref[...]                                   # (tc2, 1) broadcasts over tl
    # SiLU: y * sigmoid(y)   (sigmoid runs in the EUP slot, free vs. the DMA path)
    o_ref[...] = (y * jax.nn.sigmoid(y)).astype(o_ref.dtype)


def conv_bn_silu(x_nchw, conv_w, bn_gamma, bn_beta, bn_mean, bn_var,
                 eps=1e-3, out_dtype=jnp.bfloat16, compute_dtype=jnp.bfloat16):
    """x_nchw: (N, C1, H, W); conv_w: (C2, C1, 1, 1).  Returns (N, C2, H, W) in out_dtype."""
    N, C1, H, W = x_nchw.shape
    C2 = conv_w.shape[0]
    L = H * W

    x_itemsize = jnp.dtype(x_nchw.dtype).itemsize
    w_itemsize = jnp.dtype(compute_dtype).itemsize
    o_itemsize = jnp.dtype(out_dtype).itemsize

    # --- fold BN (eval mode): scale into the weight rows, bias kept as an f32 add ---
    scale = bn_gamma / jnp.sqrt(bn_var + eps)                          # (C2,)
    w2d = (conv_w.reshape(C2, C1) * scale[:, None]).astype(compute_dtype)
    bias = (bn_beta - bn_mean * scale).reshape(C2, 1).astype(jnp.float32)

    # --- native NCHW: flatten spatial dims only (free reshape; NO cast, NO pad) ---
    x3d = x_nchw.reshape(N, C1, L)

    # --- generation-aware VMEM ceiling (128 MiB v5e/v6e -> ~96 MiB; 64 MiB v7x -> ~48 MiB) ---
    try:
        phys_vmem = int(pltpu.get_tpu_info().vmem_capacity_bytes)
    except Exception:
        phys_vmem = 64 << 20
    vmem_ceiling = (phys_vmem * 3) // 4            # stay well under physical capacity

    # --- C2 tiling: keep the folded weight tile <= ~4 MiB so it stays comfortably
    #     resident even under v7x's 64 MiB VMEM; otherwise the weight is fully resident ---
    if C2 * C1 * w_itemsize > (4 << 20):
        tc2 = min(C2, _round_down_pos((4 << 20) // (C1 * w_itemsize), 16))
    else:
        tc2 = C2
    n_c2 = pl.cdiv(C2, tc2)

    # --- spatial tile: largest lane-aligned (multiple-of-128) tile whose double-buffered
    #     x/out tiles (plus resident weight) fit in ~half the VMEM ceiling ---
    tl = min(2048, _round_up(L, 128))
    budget = vmem_ceiling // 2 - 2 * tc2 * C1 * w_itemsize
    while tl > 128 and 2 * tl * (C1 * x_itemsize + tc2 * o_itemsize) > budget:
        tl = _round_down_pos(tl // 2, 128)
    n_j = pl.cdiv(L, tl)

    # v7x has 2 TensorCores sharded over the parallel grid -> ensure >= 2 grid steps
    # (no-op on single-TC v5e/v6e).
    while N * n_c2 * n_j < 2 and tl > 128:
        tl = _round_down_pos(tl // 2, 128)
        n_j = pl.cdiv(L, tl)

    # innermost axis = spatial -> weight block is grid-invariant along it
    grid = (N, n_c2, n_j)

    # VMEM request: double-buffered x/out tiles + weight/bias (+ headroom for temporaries)
    weight_bufs = 1 if n_c2 == 1 else 2
    blk_bytes = (2 * C1 * tl * x_itemsize
                 + 2 * tc2 * tl * o_itemsize
                 + weight_bufs * tc2 * (C1 * w_itemsize + 4))
    vmem_limit = int(min(max(4 * blk_bytes, 16 << 20), vmem_ceiling))

    # advisory cost: real traffic (native x dtype in, out_dtype out, no pad/slice passes)
    cost = pl.CostEstimate(
        flops=2 * N * L * C1 * C2,
        transcendentals=N * L * C2,                        # sigmoid per output element
        bytes_accessed=(N * L * C1 * x_itemsize            # x read at its native dtype
                        + C2 * (C1 * w_itemsize + 4)       # folded weight + bias
                        + N * L * C2 * o_itemsize),        # output write
    )

    x_spec = pl.BlockSpec((None, C1, tl), lambda n, c, j: (n, 0, j))
    out_spec = pl.BlockSpec((None, tc2, tl), lambda n, c, j: (n, c, j))
    w_map = lambda n, c, j: (c, 0)
    b_map = lambda n, c, j: (c, 0)

    def build(w_spec, b_spec):
        return pl.pallas_call(
            conv_bn_silu_kernel,
            out_shape=jax.ShapeDtypeStruct((N, C2, L), out_dtype),
            grid_spec=pltpu.PrefetchScalarGridSpec(
                num_scalar_prefetch=0,
                grid=grid,
                in_specs=[x_spec, w_spec, b_spec],
                out_specs=out_spec,
            ),
            compiler_params=pltpu.CompilerParams(
                dimension_semantics=("parallel", "parallel", "parallel"),
                vmem_limit_bytes=vmem_limit,
            ),
            cost_estimate=cost,
        )

    if n_c2 == 1:
        # Weight/bias index maps are constant -> single-buffer them to save VMEM
        # (feedback).  Fall back to default double-buffering if this JAX version
        # rejects pipeline_mode=Buffered(1).
        try:
            out3d = build(
                pl.BlockSpec((tc2, C1), w_map, pipeline_mode=pl.Buffered(1)),
                pl.BlockSpec((tc2, 1), b_map, pipeline_mode=pl.Buffered(1)),
            )(x3d, w2d, bias)
        except Exception:
            out3d = build(pl.BlockSpec((tc2, C1), w_map),
                          pl.BlockSpec((tc2, 1), b_map))(x3d, w2d, bias)
    else:
        out3d = build(pl.BlockSpec((tc2, C1), w_map),
                      pl.BlockSpec((tc2, 1), b_map))(x3d, w2d, bias)

    # NOTE: if C2 is not a multiple of the output sublane packing (16 for bf16 / 8 for
    # f32), tail sublanes of each store are masked; accepted — padding C2 would cost an
    # extra output slice pass on a memory-bound kernel.
    return out3d.reshape(N, C2, H, W)


if __name__ == "__main__":
    # Conv(c1=4, c2=8, k=1, s=1) -> autopad(1)=0, groups=1, bias=False; BN eval; SiLU
    N, C1, C2, H, W = 2, 4, 8, 16, 16

    key = jax.random.PRNGKey(0)
    kx, kw, kg, kb, km, kv = jax.random.split(key, 6)

    x = jax.random.normal(kx, (N, C1, H, W), dtype=jnp.float32)
    conv_w = jax.random.normal(kw, (C2, C1, 1, 1), dtype=jnp.float32) * 0.1
    bn_gamma = 1.0 + 0.1 * jax.random.normal(kg, (C2,), dtype=jnp.float32)
    bn_beta = 0.1 * jax.random.normal(kb, (C2,), dtype=jnp.float32)
    bn_mean = 0.1 * jax.random.normal(km, (C2,), dtype=jnp.float32)
    bn_var = jnp.abs(1.0 + 0.1 * jax.random.normal(kv, (C2,), dtype=jnp.float32))

    out = conv_bn_silu(x, conv_w, bn_gamma, bn_beta, bn_mean, bn_var)
    out = jax.block_until_ready(out)

    # pure-JAX f32 reference (eval-mode BN + SiLU); bf16 compute + bf16 out -> loose tol
    y_ref = jnp.einsum("nchw,oc->nohw", x, conv_w.reshape(C2, C1))
    scale = bn_gamma / jnp.sqrt(bn_var + 1e-3)
    y_ref = y_ref * scale[None, :, None, None] + (bn_beta - bn_mean * scale)[None, :, None, None]
    y_ref = y_ref * jax.nn.sigmoid(y_ref)

    assert out.shape == y_ref.shape
    out_f32 = out.astype(jnp.float32)
    err = float(jnp.max(jnp.abs(out_f32 - y_ref)))
    assert jnp.allclose(out_f32, y_ref, atol=3e-2, rtol=3e-2), err

    print("KERNEL_OK")
</pallas_src>

<mosaic_0001>
module attributes {stable_mosaic.version = 11 : i64} {
  func.func @conv_bn_silu_kernel(%arg0: i32, %arg1: i32, %arg2: i32, %arg3: memref<1x4x256xf32, #tpu.memory_space<vmem>>, %arg4: memref<8x4xbf16, #tpu.memory_space<vmem>>, %arg5: memref<8x1xf32, #tpu.memory_space<vmem>>, %arg6: memref<1x8x256xbf16, #tpu.memory_space<vmem>>) attributes {dimension_semantics = [#tpu.dimension_semantics<parallel>, #tpu.dimension_semantics<parallel>, #tpu.dimension_semantics<parallel>], iteration_bounds = array<i64: 2, 1, 1>, scalar_prefetch = 0 : i64, scratch_operands = 0 : i64, tpu.core_type = #tpu.core_type<tc>, window_params = [{transform_indices = @transform_0, window_bounds = array<i64: 1, 4, 256>}, {pipeline_mode = #tpu.pipeline_mode<synchronous>, transform_indices = @transform_1, window_bounds = array<i64: 8, 4>}, {pipeline_mode = #tpu.pipeline_mode<synchronous>, transform_indices = @transform_2, window_bounds = array<i64: 8, 1>}, {transform_indices = @transform_3, window_bounds = array<i64: 1, 8, 256>}]} {
    %c0 = arith.constant 0 : index
    %c0_0 = arith.constant 0 : index
    %c0_1 = arith.constant 0 : index
    %0 = vector.load %arg3[%c0, %c0_0, %c0_1] : memref<1x4x256xf32, #tpu.memory_space<vmem>>, vector<1x4x256xf32>
    %1 = vector.shape_cast %0 : vector<1x4x256xf32> to vector<4x256xf32>
    %2 = arith.truncf %1 : vector<4x256xf32> to vector<4x256xbf16>
    %c0_2 = arith.constant 0 : index
    %c0_3 = arith.constant 0 : index
    %3 = vector.load %arg4[%c0_2, %c0_3] : memref<8x4xbf16, #tpu.memory_space<vmem>>, vector<8x4xbf16>
    %cst = arith.constant dense<0.000000e+00> : vector<8x256xf32>
    %4 = tpu.matmul %3, %2, %cst {dimension_numbers = #tpu.dot_dimension_numbers<[1], [0], [0], [1], [0, 0, 1, 1], [], []>} : vector<8x4xbf16>, vector<4x256xbf16>, vector<8x256xf32> -> vector<8x256xf32>
    %c0_4 = arith.constant 0 : index
    %c0_5 = arith.constant 0 : index
    %5 = vector.load %arg5[%c0_4, %c0_5] : memref<8x1xf32, #tpu.memory_space<vmem>>, vector<8x1xf32>
    %6 = vector.broadcast %5 : vector<8x1xf32> to vector<8x256xf32>
    %7 = arith.addf %4, %6 : vector<8x256xf32>
    %8 = arith.negf %7 : vector<8x256xf32>
    %9 = math.exp %8 : vector<8x256xf32>
    %cst_6 = arith.constant 1.000000e+00 : f32
    %10 = vector.broadcast %cst_6 : f32 to vector<8x256xf32>
    %11 = arith.addf %10, %9 : vector<8x256xf32>
    %12 = arith.divf %10, %11 : vector<8x256xf32>
    %13 = arith.mulf %7, %12 : vector<8x256xf32>
    %14 = arith.truncf %13 : vector<8x256xf32> to vector<8x256xbf16>
    %c0_7 = arith.constant 0 : index
    %c0_8 = arith.constant 0 : index
    %c0_9 = arith.constant 0 : index
    %15 = vector.load %arg6[%c0_7, %c0_8, %c0_9] : memref<1x8x256xbf16, #tpu.memory_space<vmem>>, vector<1x8x256xbf16>
    %16 = vector.shape_cast %15 : vector<1x8x256xbf16> to vector<8x256xbf16>
    %17 = vector.shape_cast %14 : vector<8x256xbf16> to vector<1x8x256xbf16>
    tpu.vector_store %arg6[%c0_7, %c0_8, %c0_9], %17 {strides = array<i32>} : memref<1x8x256xbf16, #tpu.memory_space<vmem>>, vector<1x8x256xbf16>,
    return
  }
  func.func @transform_0(%arg0: i32, %arg1: i32, %arg2: i32) -> (i32, i32, i32) {
    %c0_i32 = arith.constant 0 : i32
    %c0_i32_0 = arith.constant 0 : i32
    return %arg0, %c0_i32, %arg2 : i32, i32, i32
  }
  func.func @transform_1(%arg0: i32, %arg1: i32, %arg2: i32) -> (i32, i32) {
    %c0_i32 = arith.constant 0 : i32
    %c0_i32_0 = arith.constant 0 : i32
    return %arg1, %c0_i32 : i32, i32
  }
  func.func @transform_2(%arg0: i32, %arg1: i32, %arg2: i32) -> (i32, i32) {
    %c0_i32 = arith.constant 0 : i32
    %c0_i32_0 = arith.constant 0 : i32
    return %arg1, %c0_i32 : i32, i32
  }
  func.func @transform_3(%arg0: i32, %arg1: i32, %arg2: i32) -> (i32, i32, i32) {
    %c0_i32 = arith.constant 0 : i32
    return %arg0, %arg1, %arg2 : i32, i32, i32
  }
}

module attributes {stable_mosaic.version = 11 : i64} {
  func.func @conv_bn_silu_kernel(%arg0: i32, %arg1: i32, %arg2: i32, %arg3: memref<1x4x256xf32, #tpu.memory_space<vmem>>, %arg4: memref<8x4xbf16, #tpu.memory_space<vmem>>, %arg5: memref<8x1xf32, #tpu.memory_space<vmem>>, %arg6: memref<1x8x256xbf16, #tpu.memory_space<vmem>>) attributes {dimension_semantics = [#tpu.dimension_semantics<parallel>, #tpu.dimension_semantics<parallel>, #tpu.dimension_semantics<parallel>], iteration_bounds = array<i64: 2, 1, 1>, scalar_prefetch = 0 : i64, scratch_operands = 0 : i64, tpu.core_type = #tpu.core_type<tc>, window_params = [{transform_indices = @transform_0, window_bounds = array<i64: 1, 4, 256>}, {transform_indices = @transform_1, window_bounds = array<i64: 8, 4>}, {transform_indices = @transform_2, window_bounds = array<i64: 8, 1>}, {transform_indices = @transform_3, window_bounds = array<i64: 1, 8, 256>}]} {
    %c0 = arith.constant 0 : index
    %c0_0 = arith.constant 0 : index
    %c0_1 = arith.constant 0 : index
    %0 = vector.load %arg3[%c0, %c0_0, %c0_1] : memref<1x4x256xf32, #tpu.memory_space<vmem>>, vector<1x4x256xf32>
    %1 = vector.shape_cast %0 : vector<1x4x256xf32> to vector<4x256xf32>
    %2 = arith.truncf %1 : vector<4x256xf32> to vector<4x256xbf16>
    %c0_2 = arith.constant 0 : index
    %c0_3 = arith.constant 0 : index
    %3 = vector.load %arg4[%c0_2, %c0_3] : memref<8x4xbf16, #tpu.memory_space<vmem>>, vector<8x4xbf16>
    %cst = arith.constant dense<0.000000e+00> : vector<8x256xf32>
    %4 = tpu.matmul %3, %2, %cst {dimension_numbers = #tpu.dot_dimension_numbers<[1], [0], [0], [1], [0, 0, 1, 1], [], []>} : vector<8x4xbf16>, vector<4x256xbf16>, vector<8x256xf32> -> vector<8x256xf32>
    %c0_4 = arith.constant 0 : index
    %c0_5 = arith.constant 0 : index
    %5 = vector.load %arg5[%c0_4, %c0_5] : memref<8x1xf32, #tpu.memory_space<vmem>>, vector<8x1xf32>
    %6 = vector.broadcast %5 : vector<8x1xf32> to vector<8x256xf32>
    %7 = arith.addf %4, %6 : vector<8x256xf32>
    %8 = arith.negf %7 : vector<8x256xf32>
    %9 = math.exp %8 : vector<8x256xf32>
    %cst_6 = arith.constant 1.000000e+00 : f32
    %10 = vector.broadcast %cst_6 : f32 to vector<8x256xf32>
    %11 = arith.addf %10, %9 : vector<8x256xf32>
    %12 = arith.divf %10, %11 : vector<8x256xf32>
    %13 = arith.mulf %7, %12 : vector<8x256xf32>
    %14 = arith.truncf %13 : vector<8x256xf32> to vector<8x256xbf16>
    %c0_7 = arith.constant 0 : index
    %c0_8 = arith.constant 0 : index
    %c0_9 = arith.constant 0 : index
    %15 = vector.load %arg6[%c0_7, %c0_8, %c0_9] : memref<1x8x256xbf16, #tpu.memory_space<vmem>>, vector<1x8x256xbf16>
    %16 = vector.shape_cast %15 : vector<1x8x256xbf16> to vector<8x256xbf16>
    %17 = vector.shape_cast %14 : vector<8x256xbf16> to vector<1x8x256xbf16>
    tpu.vector_store %arg6[%c0_7, %c0_8, %c0_9], %17 {strides = array<i32>} : memref<1x8x256xbf16, #tpu.memory_space<vmem>>, vector<1x8x256xbf16>,
    return
  }
  func.func @transform_0(%arg0: i32, %arg1: i32, %arg2: i32) -> (i32, i32, i32) {
    %c0_i32 = arith.constant 0 : i32
    %c0_i32_0 = arith.constant 0 : i32
    return %arg0, %c0_i32, %arg2 : i32, i32, i32
  }
  func.func @transform_1(%arg0: i32, %arg1: i32, %arg2: i32) -> (i32, i32) {
    %c0_i32 = arith.constant 0 : i32
    %c0_i32_0 = arith.constant 0 : i32
    return %arg1, %c0_i32 : i32, i32
  }
  func.func @transform_2(%arg0: i32, %arg1: i32, %arg2: i32) -> (i32, i32) {
    %c0_i32 = arith.constant 0 : i32
    %c0_i32_0 = arith.constant 0 : i32
    return %arg1, %c0_i32 : i32, i32
  }
  func.func @transform_3(%arg0: i32, %arg1: i32, %arg2: i32) -> (i32, i32, i32) {
    %c0_i32 = arith.constant 0 : i32
    return %arg0, %arg1, %arg2 : i32, i32, i32
  }
}

</mosaic_0001>

<bundles_post_ra>
// kernel: tpu_custom_call.1
= control target key start
LH: loop header
LB: loop body
LE: loop exit
PB: predicated region body
PF: predicated region fallthrough
CT: control target
= control target key end

     0   :  { %8 = vsyncpa [#allocation3], 0  ;;  %s894_s0 = inlined_call_operand.hbm [shape: f32[2,4,256], index: 0, kind: input, shape index: {}]   ;;  %s895_s1 = inlined_call_operand.vmem [shape: bf16[8,4], index: 1, kind: input, shape index: {}]   ;;  %s896_s2 = inlined_call_operand.vmem [shape: f32[8,1], index: 2, kind: input, shape index: {}]   ;;  %s897_s3 = inlined_call_operand.hbm [shape: bf16[2,8,256], index: 3, kind: output, shape index: {}]  }
   0x1   :  { %10 = vsyncpa [#allocation3 + $0x1], 0 }
   0x2   :  { %11 = vsyncpa [#allocation4], 0 }
   0x3   :  { %13 = vsyncpa [#allocation4 + $0x1], 0  ;;  %s712_s12 = smov 0   ;;  %s714_s13 = smov 0  }
   0x4   :  { %s716_s14 = smov 0   ;;  %s718_s15 = smov 0  }
   0x5   :  { %s720_s16 = smov 0   ;;  %s722_s17 = smov 0  }
   0x6 LB: > { %s477_s18 = sadd.s32 4294967295, %s687_s17   ;;  %s478_s19 = sadd.s32 4294967294, %s687_s17   ;;  %s687_s17 = sphi %s722_s17, %s19_s17   ;;  %s683_s16 = sphi %s720_s16, %s913_s16   ;;  %s679_s15 = sphi %s718_s15, %s912_s15   ;;  %s675_s14 = sphi %s716_s14, %s911_s14   ;;  %s671_s13 = sphi %s714_s13, %s910_s13   ;;  %s667_s12 = sphi %s712_s12, %s909_s12  }
   0x7   : > { %s38_s20 = sadd.s32 1, %s683_s16  ;;  %s47_s21 = sadd.s32 1, %s675_s14 }
   0x8   : > { %p40_p0 = scmp.ge.s32.totalorder %s38_s20, 2  ;;  %p54_p1 = scmp.ne.s32.totalorder %s675_s14, %s671_s13 }
   0x9   : > { %p55_p2 = scmp.eq.s32.totalorder %s687_s17, 0  ;;  %p60_p3 = scmp.ne.s32.totalorder %s671_s13, %s667_s12 }
   0xa   : > { %s915_s20 = smov (%p40_p0, %s38_s20), 0  ;;  %p61_p5 = scmp.eq.s32.totalorder %s477_s18, 0 }
   0xb   : > { %p753_p4 = por %p55_p2, %p54_p1  ;;  %s42_s23 = ssub.s32 %s683_s16, %s915_s20 }
   0xc   : > { %p140_p6 = scmp.eq.s32.totalorder %s477_s18, 1  ;;  %p45_p7 = scmp.eq.s32.totalorder %s42_s23, 0 }
   0xd   : > { %p759_p8 = por %p61_p5, %p60_p3  ;;  %p146_p10 = scmp.eq.s32.totalorder %s478_s19, 1 }
   0xe   : > { %p763_p9 = por %p140_p6, %p54_p1  ;;  %p514_p13 = scmp.lt.s32.totalorder %s687_s17, 2 }
   0xf   : > { %s768_s26 = scalar_select %p45_p7, %s675_s14, %s47_s21  }
  0x10   : > { %s901_s25 = scalar_select %p763_p9, 1, 0 }
  0x11   : > { %p770_p11 = por %p146_p10, %p60_p3  ;;  %s180_s28 = sand.u32 1, %s675_s14  }
  0x12   : > { %s483_s29 = sshll.u32 %s180_s28, 3  ;;  %s499_s30 = sshll.u32 %s683_s16, 7 }
  0x13   : > { %s902_s27 = scalar_select %p770_p11, 1, 0 }
  0x14   : > { %s781_s6 = scalar_lea.hbm %s894_s0, %s499_s30  ;;  %s184_s7 = scalar_lea.vmem [#allocation2], %s483_s29 }
  0x15   : > { %s194_s8 = sshll.u32 %s184_s7, 4  ;;  %p787_p0 = pnand %p514_p13, %p753_p4  ;;  %s783_s8 = int_to_ptr.vmem [resolvable:$true] %s194_s8 }
  0x16   : > { %s181_s10 = scalar_lea.sflag [#allocation3], %s180_s28  ;;  %s575_s11 = scalar_lea.hbm %s781_s6, 128 }
  0x17   : > { %p576_p3 = scmp.ne.s32.totalorder %s781_s6, %s575_s11  ;;  %p577_p5 = pneg %p787_p0 }
  0x18   : > { %s580_s21 = scalar_lea.hbm %s894_s0, 256  ;;  %p581_p4 = scmp.lt.u32.totalorder %s781_s6, %s894_s0 }
  0x19   : > { %p578_p6 = pnand %p577_p5, %p576_p3  ;;  %p582_p10 = scmp.lt.u32.totalorder %s580_s21, %s575_s11 }
  0x1a   : > { %p584_p12 = scmp.lt.u32.totalorder %s575_s11, %s781_s6 }
  0x1b   : > { %p579_p7 = pneg %p578_p6  ;;  %p583_p13 = por %p582_p10, %p581_p4 }
  0x1d   : > { %p585_p1 = por %p584_p12, %p583_p13 }
  0x1f   : > { %p586_p2 = pnand %p585_p1, %p579_p7 }
  0x21   : > { %589 = shalt.err (!%p586_p2)
}
  0x22   : > { %s590_s28 = scalar_lea.vmem %s783_s8, 128  ;;  %s689_s29 = smov [#allocation2]  }
  0x23   : > { %p591_p3 = scmp.ne.s32.totalorder %s783_s8, %s590_s28  ;;  %s595_s30 = sshll.u32 %s689_s29, 4  ;;  %s596_s30 = int_to_ptr.vmem [resolvable:$false] %s595_s30 }
  0x24   : > { %s597_s4 = scalar_lea.vmem %s596_s30, 256  ;;  %p598_p9 = scmp.lt.s32.totalorder %s783_s8, %s596_s30 }
  0x25   : > { %p593_p6 = pnand %p591_p3, %p577_p5  ;;  %p599_p4 = scmp.lt.s32.totalorder %s597_s4, %s590_s28 }
  0x27   : > { %p594_p11 = pneg %p593_p6  ;;  %p600_p10 = por %p599_p4, %p598_p9 }
  0x29   : > { %p601_p12 = pnand %p600_p10, %p594_p11 }
  0x2b   : > { %604 = shalt.err (!%p601_p12)
}
  0x2c   : > { %509 = dma.hbm_to_vmem [thread:$0]  (!%p787_p0), %s781_s6, 128, %s783_s8, %s181_s10  }
  0x2d   : > { %p904_p1 = scmp.lt.s32.totalorder %s687_s17, 3  ;;  %p905_p2 = scmp.ge.s32.totalorder %s687_s17, 1 }
  0x2f   : > { %p200_p5 = pnand %p905_p2, %p904_p1 }
  0x30   : > { %s823_s5 = sand.u32 (!%p200_p5), 1, %s671_s13  }
  0x31   : > { %203 = sbr.rel (%p200_p5) target bundleno = 325 (0x145), region = 32  ;;  %s487_s7 = sshll.u32 (!%p200_p5), %s823_s5, 3 }
  0x32   : > { %s206_s11 = scalar_lea.sflag (!%p200_p5), [#allocation3], %s823_s5  ;;  %s209_s9 = scalar_lea.vmem (!%p200_p5), [#allocation2], %s487_s7 }
  0x38   : > { %658 = dma.done.wait (%p759_p8), %s206_s11, 128  }
  0x39   : > { %660 = vsyncadd (%p759_p8), %s206_s11, 4294967168  ;;  %v690_v0 = vmov 0   ;;  %v251_v1 = vld [vmem:[%s209_s9] sm:$0xff]  ;;  %vm268_vm0 = vcmask 1041408   ;;  %vm264_vm1 = vcmask 31744   ;;  %s501_s24 = sshll.u32 %s679_s15, 7 }
  0x3a   : > { %307 = vmatprep.mubr.bf16.mxu0 %v690_v0  ;;  %565 = vset.pattern.permute.xlu0 %v690_v0  ;;  %v258_v2 = vld [vmem:[%s896_s2] sm:$0xff]  ;;  %v253_v3 = vcombine.high %v251_v1, %v251_v1  ;;  %v255_v4 = vpack.c.bf16 %v251_v1, %v251_v1  ;;  %s239_s19 = scalar_lea.vmem [#allocation5], %s487_s7  ;;  %s845_s28 = scalar_lea.hbm %s897_s3, %s501_s24 }
  0x3b   : > { %261 = vperm.xlu0 %565, %v258_v2   ;;  %v257_v7 = vld [vmem:[%s895_s1] sm:$0xf]  ;;  %s358_s21 = sshll.u32 %s239_s19, 4  ;;  %s340_s29 = scalar_lea.sflag [#allocation4], %s823_s5  ;;  %s847_s21 = int_to_ptr.vmem [resolvable:$true] %s358_s21 }
  0x3c   : > { %v256_v5 = vpack.c.bf16 %v253_v3, %v253_v3  ;;  %v270_v6 = vsel %vm268_vm0, %v255_v4, 0  ;;  %s605_s30 = scalar_lea.vmem %s847_s21, 128  ;;  %p906_p9 = scmp.ne.s32.totalorder %s901_s25, 0 }
  0x3d   : > { %p606_p8 = scmp.ne.s32.totalorder %s847_s21, %s605_s30  ;;  %s691_s15 = smov [#allocation5]  }
  0x3e   : > { %489 = vmatprep.subr.msk.bf16.mxu0 %vm268_vm0, %v256_v5  ;;  %s609_s4 = sshll.u32 %s691_s15, 4  ;;  %s610_s4 = int_to_ptr.vmem [resolvable:$false] %s609_s4 }
  0x3f   : > { %276 = vmatpush1.bf16.msra.mxu0 %v270_v6  ;;  %p607_p11 = pnand %p606_p8, %p906_p9  ;;  %s611_s7 = scalar_lea.vmem %s610_s4, 256 }
  0x40   : > { %p612_p7 = scmp.lt.s32.totalorder %s847_s21, %s610_s4  ;;  %p613_p13 = scmp.lt.s32.totalorder %s611_s7, %s605_s30 }
  0x41   : > { %p608_p0 = pneg %p607_p11 }
  0x42   : > { %490 = vmatmul.mubr.msk.bf16.vlgmr.msra.gmra.mrb[0].mxu0 %vm264_vm1, %v257_v7  ;;  %p614_p3 = por %p613_p13, %p612_p7 }
  0x44   : > { %p615_p6 = pnand %p614_p3, %p608_p0 }
  0xba   : > { %v262_v8 = vpop.permute.xlu0 %261 }
 0x115   : > { %v309_v9 = vpop.f32.mrb[0].mxu0 }
 0x116   : > { %v310_v10 = vadd.f32 %v309_v9, %v262_v8  ;;  %v311_v11 = vpop.f32.mrb[1].mxu0 }
 0x117   : > { %v312_v12 = vadd.f32 %v311_v11, %v262_v8  ;;  %v313_v13 = vpop.f32.mrb[2].mxu0 }
 0x118   : > { %v491_v14 = vmul.f32 -1.442695, %v310_v10  ;;  %v314_v15 = vpop.f32.mrb[3].mxu0 }
 0x119   : > { %v492_v16 = vmul.f32 -1.442695, %v312_v12 }
 0x11a   : > { %567 = vpow2.f32 %v491_v14 }
 0x11b   : > { %569 = vpow2.f32 %v492_v16 }
 0x124   : > { %v568_v17 = vpop.eup %567 }
 0x125   : > { %v570_v18 = vpop.eup %569  ;;  %v322_v19 = vadd.f32 1.0, %v568_v17 }
 0x126   : > { %v323_v20 = vadd.f32 1.0, %v570_v18 }
 0x127   : > { %571 = vrcp.f32 %v322_v19 }
 0x128   : > { %573 = vrcp.f32 %v323_v20 }
 0x131   : > { %v572_v21 = vpop.eup %571 }
 0x132   : > { %v574_v22 = vpop.eup %573  ;;  %v328_v23 = vmul.f32 %v572_v21, %v310_v10 }
 0x133   : > { %v329_v24 = vmul.f32 %v574_v22, %v312_v12 }
 0x135   : > { %v500_v25 = vpack.c.bf16 %v329_v24, %v328_v23 }
 0x137   : > { %338 = vst [vmem:[%s239_s19] sm:$0xff] %v500_v25 }
 0x138   : > { %618 = shalt.err (!%p615_p6)
}
 0x139   : > { %s619_s5 = scalar_lea.hbm %s845_s28, 128  ;;  %s623_s6 = scalar_lea.hbm %s897_s3, 256 }
 0x13a   : > { %p620_p4 = scmp.ne.s32.totalorder %s845_s28, %s619_s5  ;;  %p624_p1 = scmp.lt.u32.totalorder %s845_s28, %s897_s3 }
 0x13b   : > { %p625_p2 = scmp.lt.u32.totalorder %s623_s6, %s619_s5  ;;  %p627_p8 = scmp.lt.u32.totalorder %s619_s5, %s845_s28 }
 0x13c   : > { %p621_p10 = pnand %p620_p4, %p906_p9 }
 0x13d   : > { %p626_p5 = por %p625_p2, %p624_p1 }
 0x13e   : > { %p622_p12 = pneg %p621_p10 }
 0x13f   : > { %p628_p11 = por %p627_p8, %p626_p5 }
 0x141   : > { %p629_p0 = pnand %p628_p11, %p622_p12 }
 0x143   : > { %632 = shalt.err (!%p629_p0)
}
 0x144   : > { %504 = dma.vmem_to_hbm [thread:$0]  (%p906_p9), %s847_s21, 128, %s845_s28, %s340_s29  }
 0x145 PF: > { %s370_s18 = sand.u32 1, %s667_s12   ;;  %p907_p7 = scmp.ne.s32.totalorder %s902_s27, 0 }
 0x146   : > { %p908_p13 = scmp.ge.s32.totalorder %s687_s17, 2  ;;  %s371_s24 = scalar_lea.sflag [#allocation4], %s370_s18 }
 0x148   : > { %p511_p3 = pnand %p908_p13, %p907_p7 }
 0x14a   : > { %662 = dma.done.wait (!%p511_p3), %s371_s24, 128  }
 0x14b   : > { %664 = vsyncadd (!%p511_p3), %s371_s24, 4294967168  ;;  %s19_s17 = sadd.s32 1, %s687_s17   ;;  %s909_s12 = smov %s671_s13 }
 0x14c   : > { %p16_p6 = scmp.ge.s32.totalorder %s19_s17, 4   ;;  %s910_s13 = smov %s675_s14 }
 0x14d   : > { %s911_s14 = smov %s768_s26  ;;  %s912_s15 = smov %s683_s16 }
 0x14e   : > { %s913_s16 = smov %s915_s20  ;;  %18 = sbr.rel (!%p16_p6) target bundleno = 6 (0x6), region = 83 }
 0x155   :  { %376 = vsyncpa [#allocation3], 1 }
 0x156   :  { %378 = vsyncpa [#allocation3 + $0x1], 1 }
 0x157   :  { %379 = vsyncpa [#allocation4], 1 }
 0x158   :  { %381 = vsyncpa [#allocation4 + $0x1], 1 }

// kernel: tpu_custom_call.1
= control target key start
LH: loop header
LB: loop body
LE: loop exit
PB: predicated region body
PF: predicated region fallthrough
CT: control target
= control target key end

     0   :  { %8 = vsyncpa [#allocation3], 0  ;;  %s894_s0 = inlined_call_operand.hbm [shape: f32[2,4,256], index: 0, kind: input, shape index: {}]   ;;  %s895_s1 = inlined_call_operand.vmem [shape: bf16[8,4], index: 1, kind: input, shape index: {}]   ;;  %s896_s2 = inlined_call_operand.vmem [shape: f32[8,1], index: 2, kind: input, shape index: {}]   ;;  %s897_s3 = inlined_call_operand.hbm [shape: bf16[2,8,256], index: 3, kind: output, shape index: {}]  }
   0x1   :  { %10 = vsyncpa [#allocation3 + $0x1], 0 }
   0x2   :  { %11 = vsyncpa [#allocation4], 0 }
   0x3   :  { %13 = vsyncpa [#allocation4 + $0x1], 0  ;;  %s712_s12 = smov 0   ;;  %s714_s13 = smov 0  }
   0x4   :  { %s716_s14 = smov 0   ;;  %s718_s15 = smov 0  }
   0x5   :  { %s720_s16 = smov 0   ;;  %s722_s17 = smov 0  }
   0x6 LB: > { %s477_s18 = sadd.s32 4294967295, %s687_s17   ;;  %s478_s19 = sadd.s32 4294967294, %s687_s17   ;;  %s687_s17 = sphi %s722_s17, %s19_s17   ;;  %s683_s16 = sphi %s720_s16, %s913_s16   ;;  %s679_s15 = sphi %s718_s15, %s912_s15   ;;  %s675_s14 = sphi %s716_s14, %s911_s14   ;;  %s671_s13 = sphi %s714_s13, %s910_s13   ;;  %s667_s12 = sphi %s712_s12, %s909_s12  }
   0x7   : > { %s38_s20 = sadd.s32 1, %s683_s16  ;;  %s47_s21 = sadd.s32 1, %s675_s14 }
   0x8   : > { %p40_p0 = scmp.ge.s32.totalorder %s38_s20, 2  ;;  %p54_p1 = scmp.ne.s32.totalorder %s675_s14, %s671_s13 }
   0x9   : > { %p55_p2 = scmp.eq.s32.totalorder %s687_s17, 0  ;;  %p60_p3 = scmp.ne.s32.totalorder %s671_s13, %s667_s12 }
   0xa   : > { %s915_s20 = smov (%p40_p0, %s38_s20), 0  ;;  %p61_p5 = scmp.eq.s32.totalorder %s477_s18, 0 }
   0xb   : > { %p753_p4 = por %p55_p2, %p54_p1  ;;  %s42_s23 = ssub.s32 %s683_s16, %s915_s20 }
   0xc   : > { %p140_p6 = scmp.eq.s32.totalorder %s477_s18, 1  ;;  %p45_p7 = scmp.eq.s32.totalorder %s42_s23, 0 }
   0xd   : > { %p759_p8 = por %p61_p5, %p60_p3  ;;  %p146_p10 = scmp.eq.s32.totalorder %s478_s19, 1 }
   0xe   : > { %p763_p9 = por %p140_p6, %p54_p1  ;;  %p514_p13 = scmp.lt.s32.totalorder %s687_s17, 2 }
   0xf   : > { %s768_s26 = scalar_select %p45_p7, %s675_s14, %s47_s21  }
  0x10   : > { %s901_s25 = scalar_select %p763_p9, 1, 0 }
  0x11   : > { %p770_p11 = por %p146_p10, %p60_p3  ;;  %s180_s28 = sand.u32 1, %s675_s14  }
  0x12   : > { %s483_s29 = sshll.u32 %s180_s28, 3  ;;  %s499_s30 = sshll.u32 %s683_s16, 7 }
  0x13   : > { %s902_s27 = scalar_select %p770_p11, 1, 0 }
  0x14   : > { %s781_s6 = scalar_lea.hbm %s894_s0, %s499_s30  ;;  %s184_s7 = scalar_lea.vmem [#allocation2], %s483_s29 }
  0x15   : > { %s194_s8 = sshll.u32 %s184_s7, 4  ;;  %p787_p0 = pnand %p514_p13, %p753_p4  ;;  %s783_s8 = int_to_ptr.vmem [resolvable:$true] %s194_s8 }
  0x16   : > { %s181_s10 = scalar_lea.sflag [#allocation3], %s180_s28  ;;  %s575_s11 = scalar_lea.hbm %s781_s6, 128 }
  0x17   : > { %p576_p3 = scmp.ne.s32.totalorder %s781_s6, %s575_s11  ;;  %p577_p5 = pneg %p787_p0 }
  0x18   : > { %s580_s21 = scalar_lea.hbm %s894_s0, 256  ;;  %p581_p4 = scmp.lt.u32.totalorder %s781_s6, %s894_s0 }
  0x19   : > { %p578_p6 = pnand %p577_p5, %p576_p3  ;;  %p582_p10 = scmp.lt.u32.totalorder %s580_s21, %s575_s11 }
  0x1a   : > { %p584_p12 = scmp.lt.u32.totalorder %s575_s11, %s781_s6 }
  0x1b   : > { %p579_p7 = pneg %p578_p6  ;;  %p583_p13 = por %p582_p10, %p581_p4 }
  0x1d   : > { %p585_p1 = por %p584_p12, %p583_p13 }
  0x1f   : > { %p586_p2 = pnand %p585_p1, %p579_p7 }
  0x21   : > { %589 = shalt.err (!%p586_p2)
}
  0x22   : > { %s590_s28 = scalar_lea.vmem %s783_s8, 128  ;;  %s689_s29 = smov [#allocation2]  }
  0x23   : > { %p591_p3 = scmp.ne.s32.totalorder %s783_s8, %s590_s28  ;;  %s595_s30 = sshll.u32 %s689_s29, 4  ;;  %s596_s30 = int_to_ptr.vmem [resolvable:$false] %s595_s30 }
  0x24   : > { %s597_s4 = scalar_lea.vmem %s596_s30, 256  ;;  %p598_p9 = scmp.lt.s32.totalorder %s783_s8, %s596_s30 }
  0x25   : > { %p593_p6 = pnand %p591_p3, %p577_p5  ;;  %p599_p4 = scmp.lt.s32.totalorder %s597_s4, %s590_s28 }
  0x27   : > { %p594_p11 = pneg %p593_p6  ;;  %p600_p10 = por %p599_p4, %p598_p9 }
  0x29   : > { %p601_p12 = pnand %p600_p10, %p594_p11 }
  0x2b   : > { %604 = shalt.err (!%p601_p12)
}
  0x2c   : > { %509 = dma.hbm_to_vmem [thread:$0]  (!%p787_p0), %s781_s6, 128, %s783_s8, %s181_s10  }
  0x2d   : > { %p904_p1 = scmp.lt.s32.totalorder %s687_s17, 3  ;;  %p905_p2 = scmp.ge.s32.totalorder %s687_s17, 1 }
  0x2f   : > { %p200_p5 = pnand %p905_p2, %p904_p1 }
  0x30   : > { %s823_s5 = sand.u32 (!%p200_p5), 1, %s671_s13  }
  0x31   : > { %203 = sbr.rel (%p200_p5) target bundleno = 325 (0x145), region = 32  ;;  %s487_s7 = sshll.u32 (!%p200_p5), %s823_s5, 3 }
  0x32   : > { %s206_s11 = scalar_lea.sflag (!%p200_p5), [#allocation3], %s823_s5  ;;  %s209_s9 = scalar_lea.vmem (!%p200_p5), [#allocation2], %s487_s7 }
  0x38   : > { %658 = dma.done.wait (%p759_p8), %s206_s11, 128  }
  0x39   : > { %660 = vsyncadd (%p759_p8), %s206_s11, 4294967168  ;;  %v690_v0 = vmov 0   ;;  %v251_v1 = vld [vmem:[%s209_s9] sm:$0xff]  ;;  %vm268_vm0 = vcmask 1041408   ;;  %vm264_vm1 = vcmask 31744   ;;  %s501_s24 = sshll.u32 %s679_s15, 7 }
  0x3a   : > { %307 = vmatprep.mubr.bf16.mxu0 %v690_v0  ;;  %565 = vset.pattern.permute.xlu0 %v690_v0  ;;  %v258_v2 = vld [vmem:[%s896_s2] sm:$0xff]  ;;  %v253_v3 = vcombine.high %v251_v1, %v251_v1  ;;  %v255_v4 = vpack.c.bf16 %v251_v1, %v251_v1  ;;  %s239_s19 = scalar_lea.vmem [#allocation5], %s487_s7  ;;  %s845_s28 = scalar_lea.hbm %s897_s3, %s501_s24 }
  0x3b   : > { %261 = vperm.xlu0 %565, %v258_v2   ;;  %v257_v7 = vld [vmem:[%s895_s1] sm:$0xf]  ;;  %s358_s21 = sshll.u32 %s239_s19, 4  ;;  %s340_s29 = scalar_lea.sflag [#allocation4], %s823_s5  ;;  %s847_s21 = int_to_ptr.vmem [resolvable:$true] %s358_s21 }
  0x3c   : > { %v256_v5 = vpack.c.bf16 %v253_v3, %v253_v3  ;;  %v270_v6 = vsel %vm268_vm0, %v255_v4, 0  ;;  %s605_s30 = scalar_lea.vmem %s847_s21, 128  ;;  %p906_p9 = scmp.ne.s32.totalorder %s901_s25, 0 }
  0x3d   : > { %p606_p8 = scmp.ne.s32.totalorder %s847_s21, %s605_s30  ;;  %s691_s15 = smov [#allocation5]  }
  0x3e   : > { %489 = vmatprep.subr.msk.bf16.mxu0 %vm268_vm0, %v256_v5  ;;  %s609_s4 = sshll.u32 %s691_s15, 4  ;;  %s610_s4 = int_to_ptr.vmem [resolvable:$false] %s609_s4 }
  0x3f   : > { %276 = vmatpush1.bf16.msra.mxu0 %v270_v6  ;;  %p607_p11 = pnand %p606_p8, %p906_p9  ;;  %s611_s7 = scalar_lea.vmem %s610_s4, 256 }
  0x40   : > { %p612_p7 = scmp.lt.s32.totalorder %s847_s21, %s610_s4  ;;  %p613_p13 = scmp.lt.s32.totalorder %s611_s7, %s605_s30 }
  0x41   : > { %p608_p0 = pneg %p607_p11 }
  0x42   : > { %490 = vmatmul.mubr.msk.bf16.vlgmr.msra.gmra.mrb[0].mxu0 %vm264_vm1, %v257_v7  ;;  %p614_p3 = por %p613_p13, %p612_p7 }
  0x44   : > { %p615_p6 = pnand %p614_p3, %p608_p0 }
  0xba   : > { %v262_v8 = vpop.permute.xlu0 %261 }
 0x115   : > { %v309_v9 = vpop.f32.mrb[0].mxu0 }
 0x116   : > { %v310_v10 = vadd.f32 %v309_v9, %v262_v8  ;;  %v311_v11 = vpop.f32.mrb[1].mxu0 }
 0x117   : > { %v312_v12 = vadd.f32 %v311_v11, %v262_v8  ;;  %v313_v13 = vpop.f32.mrb[2].mxu0 }
 0x118   : > { %v491_v14 = vmul.f32 -1.442695, %v310_v10  ;;  %v314_v15 = vpop.f32.mrb[3].mxu0 }
 0x119   : > { %v492_v16 = vmul.f32 -1.442695, %v312_v12 }
 0x11a   : > { %567 = vpow2.f32 %v491_v14 }
 0x11b   : > { %569 = vpow2.f32 %v492_v16 }
 0x124   : > { %v568_v17 = vpop.eup %567 }
 0x125   : > { %v570_v18 = vpop.eup %569  ;;  %v322_v19 = vadd.f32 1.0, %v568_v17 }
 0x126   : > { %v323_v20 = vadd.f32 1.0, %v570_v18 }
 0x127   : > { %571 = vrcp.f32 %v322_v19 }
 0x128   : > { %573 = vrcp.f32 %v323_v20 }
 0x131   : > { %v572_v21 = vpop.eup %571 }
 0x132   : > { %v574_v22 = vpop.eup %573  ;;  %v328_v23 = vmul.f32 %v572_v21, %v310_v10 }
 0x133   : > { %v329_v24 = vmul.f32 %v574_v22, %v312_v12 }
 0x135   : > { %v500_v25 = vpack.c.bf16 %v329_v24, %v328_v23 }
 0x137   : > { %338 = vst [vmem:[%s239_s19] sm:$0xff] %v500_v25 }
 0x138   : > { %618 = shalt.err (!%p615_p6)
}
 0x139   : > { %s619_s5 = scalar_lea.hbm %s845_s28, 128  ;;  %s623_s6 = scalar_lea.hbm %s897_s3, 256 }
 0x13a   : > { %p620_p4 = scmp.ne.s32.totalorder %s845_s28, %s619_s5  ;;  %p624_p1 = scmp.lt.u32.totalorder %s845_s28, %s897_s3 }
 0x13b   : > { %p625_p2 = scmp.lt.u32.totalorder %s623_s6, %s619_s5  ;;  %p627_p8 = scmp.lt.u32.totalorder %s619_s5, %s845_s28 }
 0x13c   : > { %p621_p10 = pnand %p620_p4, %p906_p9 }
 0x13d   : > { %p626_p5 = por %p625_p2, %p624_p1 }
 0x13e   : > { %p622_p12 = pneg %p621_p10 }
 0x13f   : > { %p628_p11 = por %p627_p8, %p626_p5 }
 0x141   : > { %p629_p0 = pnand %p628_p11, %p622_p12 }
 0x143   : > { %632 = shalt.err (!%p629_p0)
}
 0x144   : > { %504 = dma.vmem_to_hbm [thread:$0]  (%p906_p9), %s847_s21, 128, %s845_s28, %s340_s29  }
 0x145 PF: > { %s370_s18 = sand.u32 1, %s667_s12   ;;  %p907_p7 = scmp.ne.s32.totalorder %s902_s27, 0 }
 0x146   : > { %p908_p13 = scmp.ge.s32.totalorder %s687_s17, 2  ;;  %s371_s24 = scalar_lea.sflag [#allocation4], %s370_s18 }
 0x148   : > { %p511_p3 = pnand %p908_p13, %p907_p7 }
 0x14a   : > { %662 = dma.done.wait (!%p511_p3), %s371_s24, 128  }
 0x14b   : > { %664 = vsyncadd (!%p511_p3), %s371_s24, 4294967168  ;;  %s19_s17 = sadd.s32 1, %s687_s17   ;;  %s909_s12 = smov %s671_s13 }
 0x14c   : > { %p16_p6 = scmp.ge.s32.totalorder %s19_s17, 4   ;;  %s910_s13 = smov %s675_s14 }
 0x14d   : > { %s911_s14 = smov %s768_s26  ;;  %s912_s15 = smov %s683_s16 }
 0x14e   : > { %s913_s16 = smov %s915_s20  ;;  %18 = sbr.rel (!%p16_p6) target bundleno = 6 (0x6), region = 83 }
 0x155   :  { %376 = vsyncpa [#allocation3], 1 }
 0x156   :  { %378 = vsyncpa [#allocation3 + $0x1], 1 }
 0x157   :  { %379 = vsyncpa [#allocation4], 1 }
 0x158   :  { %381 = vsyncpa [#allocation4 + $0x1], 1 }

</bundles_post_ra>
